<compile_context>
chip_gen: v7x
topology: tpu7x:2x2x1
jax: 0.10.0
libtpu: 0.0.40
codegen_flags: <defaults>
</compile_context>

<pallas_src>
import functools

import jax
import jax.numpy as jnp
from jax.experimental import pallas as pl
from jax.experimental.pallas import tpu as pltpu

_VMEM_LIMIT = 32 * 1024 * 1024   # safe scoped-VMEM ceiling on v5e/v6e/v7x
_ROW_TILE = 512                  # target row tile for the (M, C) kernels
_LN_EPS = 1e-6                   # matches LayerNorm(..., eps=1e-06) in the module


def _gelu(x):
    return jax.nn.gelu(x, approximate=True)


def _cparams(n_axes=1):
    return pltpu.CompilerParams(
        dimension_semantics=("parallel",) * n_axes,
        vmem_limit_bytes=_VMEM_LIMIT,
    )


def _round_up(x, m):
    return (x + m - 1) // m * m


def _pick_tm(m):
    return min(_ROW_TILE, _round_up(m, 8))


def _pad_rows(x, mp):
    m = x.shape[0]
    if mp != m:
        x = jnp.pad(x, ((0, mp - m), (0, 0)))
    return x


def _bf16(x):
    return x.astype(jnp.bfloat16)


# ---------------------------------------------------------------------------
# Kernel 1: 1x1 conv (BN/bias pre-folded into w, b) + optional activation
# ---------------------------------------------------------------------------
def _conv1x1_kernel(x_ref, w_ref, b_ref, o_ref, *, act):
    y = jnp.dot(_bf16(x_ref[...]), _bf16(w_ref[...]),
                preferred_element_type=jnp.float32) + b_ref[...]
    if act == "relu":
        y = jnp.maximum(y, 0.0)
    elif act == "gelu":
        y = _gelu(y)
    o_ref[...] = y


def conv1x1(x, w, b, act=None):
    m, cin = x.shape
    cout = w.shape[1]
    tm = _pick_tm(m)
    mp = _round_up(m, tm)
    out = pl.pallas_call(
        functools.partial(_conv1x1_kernel, act=act),
        out_shape=jax.ShapeDtypeStruct((mp, cout), jnp.float32),
        grid=(mp // tm,),
        in_specs=[
            pl.BlockSpec((tm, cin), lambda i: (i, 0)),
            pl.BlockSpec((cin, cout), lambda i: (0, 0)),
            pl.BlockSpec((1, cout), lambda i: (0, 0)),
        ],
        out_specs=pl.BlockSpec((tm, cout), lambda i: (i, 0)),
        compiler_params=_cparams(),
    )(_pad_rows(x, mp), w, b)
    return out[:m]


# ---------------------------------------------------------------------------
# Kernel 2: fused X_f chain
#   W_local = l @ Wl + bl ; W_global = g @ Wg + bg ; (opt W_f pooled)
#   concat -> channels-first LayerNorm -> W3/W conv (LN + BN pre-folded) -> GELU
#   All done without materializing the concat (stats + block matmuls).
# ---------------------------------------------------------------------------
def _xf_kernel(*refs, has_f, c_total, eps):
    if has_f:
        (wf_ref, l_ref, g_ref, wl_w, wl_b, wg_w, wg_b,
         w3_f, w3_l, w3_g, colsum_ref, bias_ref, o_ref) = refs
    else:
        (l_ref, g_ref, wl_w, wl_b, wg_w, wg_b,
         w3_l, w3_g, colsum_ref, bias_ref, o_ref) = refs

    def mm(a, b):
        return jnp.dot(_bf16(a), _bf16(b), preferred_element_type=jnp.float32)

    wl = mm(l_ref[...], wl_w[...]) + wl_b[...]
    wg = mm(g_ref[...], wg_w[...]) + wg_b[...]
    if has_f:
        parts = (wf_ref[...], wl, wg)
        w3s = (w3_f, w3_l, w3_g)
    else:
        parts = (wl, wg)
        w3s = (w3_l, w3_g)

    # LayerNorm statistics of the (virtual) channel concat.
    s = parts[0].sum(axis=-1, keepdims=True)
    for p in parts[1:]:
        s = s + p.sum(axis=-1, keepdims=True)
    mu = s / c_total
    ss = ((parts[0] - mu) ** 2).sum(axis=-1, keepdims=True)
    for p in parts[1:]:
        ss = ss + ((p - mu) ** 2).sum(axis=-1, keepdims=True)
    inv = jax.lax.rsqrt(ss / c_total + eps)

    # LN weight/bias and the following conv's BN are folded into w3_* / bias.
    z = mm(parts[0], w3s[0][...])
    for p, wref in zip(parts[1:], w3s[1:]):
        z = z + mm(p, wref[...])
    y = inv * (z - mu * colsum_ref[...]) + bias_ref[...]
    o_ref[...] = _gelu(y)


def xf_fused(l_flat, g_flat, wf_flat, wl_w, wl_b, wg_w, wg_b,
             w3_blocks, colsum, bias):
    m = l_flat.shape[0]
    ci = wl_w.shape[1]
    has_f = wf_flat is not None
    c_total = float((3 if has_f else 2) * ci)
    tm = _pick_tm(m)
    mp = _round_up(m, tm)

    data, data_specs = [], []
    if has_f:
        data.append(_pad_rows(wf_flat, mp))
        data_specs.append(pl.BlockSpec((tm, ci), lambda i: (i, 0)))
    data += [_pad_rows(l_flat, mp), _pad_rows(g_flat, mp)]
    data_specs += [
        pl.BlockSpec((tm, l_flat.shape[1]), lambda i: (i, 0)),
        pl.BlockSpec((tm, g_flat.shape[1]), lambda i: (i, 0)),
    ]
    weights = [wl_w, wl_b, wg_w, wg_b] + list(w3_blocks) + [colsum, bias]
    w_specs = [pl.BlockSpec(a.shape, lambda i, nd=a.ndim: (0,) * nd)
               for a in weights]

    out = pl.pallas_call(
        functools.partial(_xf_kernel, has_f=has_f, c_total=c_total, eps=_LN_EPS),
        out_shape=jax.ShapeDtypeStruct((mp, ci), jnp.float32),
        grid=(mp // tm,),
        in_specs=data_specs + w_specs,
        out_specs=pl.BlockSpec((tm, ci), lambda i: (i, 0)),
        compiler_params=_cparams(),
    )(*data, *weights)
    return out[:m]


# ---------------------------------------------------------------------------
# Kernel 3: spatial attention (per-batch grid)
#   max/mean over channels -> 7x7 conv (2->1, pad 3) -> folded BN -> sigmoid -> * l
# ---------------------------------------------------------------------------
def _spatial_attn_kernel(l_ref, w7_ref, bn_ref, o_ref, maxp, avgp, *, H, W):
    l = l_ref[...]                                     # (1, H, W, C)
    # tiny 2-D halo buffers: full zero each step (safe under megacore split)
    maxp[...] = jnp.zeros(maxp.shape, maxp.dtype)
    avgp[...] = jnp.zeros(avgp.shape, avgp.dtype)
    maxp[:, 3:3 + H, 3:3 + W] = jnp.max(l, axis=-1)
    avgp[:, 3:3 + H, 3:3 + W] = jnp.mean(l, axis=-1)
    acc = jnp.zeros((1, H, W), jnp.float32)
    for kh in range(7):
        for kw in range(7):
            acc = acc + maxp[:, kh:kh + H, kw:kw + W] * w7_ref[kh * 14 + kw * 2]
            acc = acc + avgp[:, kh:kh + H, kw:kw + W] * w7_ref[kh * 14 + kw * 2 + 1]
    s = acc * bn_ref[0] + bn_ref[1]                    # folded BatchNorm2d(1)
    o_ref[...] = l * jax.nn.sigmoid(s)[..., None]


def spatial_attention(l_nhwc, w7_flat, bn2):
    n, h, w, c = l_nhwc.shape
    return pl.pallas_call(
        functools.partial(_spatial_attn_kernel, H=h, W=w),
        out_shape=jax.ShapeDtypeStruct((n, h, w, c), jnp.float32),
        grid=(n,),
        in_specs=[
            pl.BlockSpec((1, h, w, c), lambda b: (b, 0, 0, 0)),
            pl.BlockSpec(memory_space=pltpu.MemorySpace.SMEM),
            pl.BlockSpec(memory_space=pltpu.MemorySpace.SMEM),
        ],
        out_specs=pl.BlockSpec((1, h, w, c), lambda b: (b, 0, 0, 0)),
        scratch_shapes=[
            pltpu.VMEM((1, h + 6, w + 6), jnp.float32),
            pltpu.VMEM((1, h + 6, w + 6), jnp.float32),
        ],
        compiler_params=_cparams(),
    )(l_nhwc, w7_flat, bn2)


# ---------------------------------------------------------------------------
# Kernel 4: channel (SE) attention (per-batch grid)
#   global max/avg pool -> shared MLP -> sigmoid(sigmoid(.)) (per reference) -> * g
# ---------------------------------------------------------------------------
def _channel_attn_kernel(g_ref, w1_ref, w2_ref, o_ref):
    g = g_ref[...]                                     # (1, H, W, C)
    gmax = jnp.max(g, axis=(1, 2))                     # (1, C)
    gavg = jnp.mean(g, axis=(1, 2))                    # (1, C)

    def se(x):
        h = jnp.maximum(
            jnp.dot(x, w1_ref[...], preferred_element_type=jnp.float32), 0.0)
        return jnp.dot(h, w2_ref[...], preferred_element_type=jnp.float32)

    out = jax.nn.sigmoid(se(gmax) + se(gavg))
    attn = jax.nn.sigmoid(out)                         # double sigmoid (matches ref)
    o_ref[...] = g * attn[:, None, None, :]


def channel_attention(g_nhwc, w1, w2):
    n, h, w, c = g_nhwc.shape
    cr = w1.shape[1]
    return pl.pallas_call(
        _channel_attn_kernel,
        out_shape=jax.ShapeDtypeStruct((n, h, w, c), jnp.float32),
        grid=(n,),
        in_specs=[
            pl.BlockSpec((1, h, w, c), lambda b: (b, 0, 0, 0)),
            pl.BlockSpec((c, cr), lambda b: (0, 0)),
            pl.BlockSpec((cr, c), lambda b: (0, 0)),
        ],
        out_specs=pl.BlockSpec((1, h, w, c), lambda b: (b, 0, 0, 0)),
        compiler_params=_cparams(),
    )(g_nhwc, w1, w2)


# ---------------------------------------------------------------------------
# Kernel 5: fused  concat([g, l, X_f]) -> LayerNorm3 -> IRMLP stage 1
#   (3x3 dense conv -> GELU -> + residual -> folded BN1), per-batch grid.
#   The concat is built lane-dense via constant channel-embedding matmuls
#   (eg/el/ef carry diag(ln3_w) per part), so no in-kernel concat and no
#   lane-sliced scatter stores are needed.
# ---------------------------------------------------------------------------
def _irmlp_stage1_kernel(g_ref, l_ref, xf_ref, eg_ref, el_ref, ef_ref,
                         lnw_ref, lnb_ref, w1_ref, s1_ref, t1_ref,
                         o_ref, xpad, acc, *, H, W, eps):
    c3 = o_ref.shape[-1]
    g = g_ref[...].reshape(H * W, g_ref.shape[-1])
    l = l_ref[...].reshape(H * W, l_ref.shape[-1])
    xf = xf_ref[...].reshape(H * W, xf_ref.shape[-1])

    # channels-first LayerNorm stats over the (virtual) [g, l, X_f] concat
    s = (jnp.sum(g, axis=-1, keepdims=True)
         + jnp.sum(l, axis=-1, keepdims=True)
         + jnp.sum(xf, axis=-1, keepdims=True))
    mu = s / c3
    ss = (jnp.sum((g - mu) ** 2, axis=-1, keepdims=True)
          + jnp.sum((l - mu) ** 2, axis=-1, keepdims=True)
          + jnp.sum((xf - mu) ** 2, axis=-1, keepdims=True))
    inv = jax.lax.rsqrt(ss / c3 + eps)

    # xcat == LayerNorm3(concat([g, l, X_f])), assembled in full-lane form.
    z = (jnp.dot(g, eg_ref[...], preferred_element_type=jnp.float32)
         + jnp.dot(l, el_ref[...], preferred_element_type=jnp.float32)
         + jnp.dot(xf, ef_ref[...], preferred_element_type=jnp.float32))
    xcat = inv * (z - mu * lnw_ref[...]) + lnb_ref[...]        # (H*W, c3)

    # zero only the 1-pixel halo border every step (correct even if the batch
    # grid axis is split across TensorCores), then write the interior.
    zrow = jnp.zeros((1, 1, W + 2, c3), jnp.float32)
    zcol = jnp.zeros((1, H + 2, 1, c3), jnp.float32)
    xpad[:, 0:1, :, :] = zrow
    xpad[:, H + 1:H + 2, :, :] = zrow
    xpad[:, :, 0:1, :] = zcol
    xpad[:, :, W + 1:W + 2, :] = zcol
    xpad[:, 1:1 + H, 1:1 + W, :] = xcat.reshape(1, H, W, c3)

    # dense 3x3 conv (reference Conv ignores `group`); VMEM accumulator.
    acc[...] = jnp.zeros(acc.shape, acc.dtype)
    for kh in range(3):
        for kw in range(3):
            patch = xpad[:, kh:kh + H, kw:kw + W, :].reshape(H * W, c3)
            acc[...] += jnp.dot(_bf16(patch), _bf16(w1_ref[kh, kw]),
                                preferred_element_type=jnp.float32)

    y = _gelu(acc[...]) + xcat                         # residual = LN3 output
    y = y * s1_ref[...] + t1_ref[...]                  # folded BatchNorm2d(c3)
    o_ref[...] = y.reshape(1, H, W, c3)


def irmlp_stage1(g_att, l_att, xf_nhwc, q):
    n, h, w, c2 = g_att.shape
    c1 = l_att.shape[-1]
    ci = xf_nhwc.shape[-1]
    c3 = c1 + c2 + ci
    weights = [q["ln3_eg"], q["ln3_el"], q["ln3_ef"], q["ln3_w"], q["ln3_b"],
               q["ir_w1"], q["ir_bn1"][0], q["ir_bn1"][1]]
    w_specs = [pl.BlockSpec(a.shape, lambda b, nd=a.ndim: (0,) * nd)
               for a in weights]
    return pl.pallas_call(
        functools.partial(_irmlp_stage1_kernel, H=h, W=w, eps=_LN_EPS),
        out_shape=jax.ShapeDtypeStruct((n, h, w, c3), jnp.float32),
        grid=(n,),
        in_specs=[
            pl.BlockSpec((1, h, w, c2), lambda b: (b, 0, 0, 0)),
            pl.BlockSpec((1, h, w, c1), lambda b: (b, 0, 0, 0)),
            pl.BlockSpec((1, h, w, ci), lambda b: (b, 0, 0, 0)),
            *w_specs,
        ],
        out_specs=pl.BlockSpec((1, h, w, c3), lambda b: (b, 0, 0, 0)),
        scratch_shapes=[
            pltpu.VMEM((1, h + 2, w + 2, c3), jnp.float32),
            pltpu.VMEM((h * w, c3), jnp.float32),
        ],
        compiler_params=_cparams(),
    )(g_att, l_att, xf_nhwc, *weights)


# ---------------------------------------------------------------------------
# Kernel 6: fused IRMLP tail:  conv2(1x1) -> GELU -> conv3(1x1)+BN3 [+shortcut]
#   The (tm, 4*C3) hidden activation stays in VMEM/registers.
# ---------------------------------------------------------------------------
def _irmlp_tail_kernel(*refs, with_shortcut):
    if with_shortcut:
        x_ref, sc_ref, w2_ref, w3_ref, b3_ref, o_ref = refs
    else:
        x_ref, w2_ref, w3_ref, b3_ref, o_ref = refs
    h = jnp.dot(_bf16(x_ref[...]), _bf16(w2_ref[...]),
                preferred_element_type=jnp.float32)
    h = _gelu(h)
    y = jnp.dot(_bf16(h), _bf16(w3_ref[...]),
                preferred_element_type=jnp.float32) + b3_ref[...]
    if with_shortcut:
        y = y + sc_ref[...]                            # DropPath(0.0) == identity
    o_ref[...] = y


def irmlp_tail(x, w2, w3, b3, shortcut=None):
    m, c3 = x.shape
    hdim = w2.shape[1]
    cout = w3.shape[1]
    tm = _pick_tm(m)
    mp = _round_up(m, tm)
    with_shortcut = shortcut is not None

    data = [_pad_rows(x, mp)]
    specs = [pl.BlockSpec((tm, c3), lambda i: (i, 0))]
    if with_shortcut:
        data.append(_pad_rows(shortcut, mp))
        specs.append(pl.BlockSpec((tm, shortcut.shape[1]), lambda i: (i, 0)))
    data += [w2, w3, b3]
    specs += [
        pl.BlockSpec((c3, hdim), lambda i: (0, 0)),
        pl.BlockSpec((hdim, cout), lambda i: (0, 0)),
        pl.BlockSpec((1, cout), lambda i: (0, 0)),
    ]
    out = pl.pallas_call(
        functools.partial(_irmlp_tail_kernel, with_shortcut=with_shortcut),
        out_shape=jax.ShapeDtypeStruct((mp, cout), jnp.float32),
        grid=(mp // tm,),
        in_specs=specs,
        out_specs=pl.BlockSpec((tm, cout), lambda i: (i, 0)),
        compiler_params=_cparams(),
    )(*data)
    return out[:m]


# ---------------------------------------------------------------------------
# Parameters: synthetic init (matmul layout) + eval-mode folding
# ---------------------------------------------------------------------------
def _bn_affine(key, c, eps=1e-5):
    k1, k2, k3, k4 = jax.random.split(key, 4)
    gamma = 1.0 + 0.1 * jax.random.normal(k1, (c,))
    beta = 0.1 * jax.random.normal(k2, (c,))
    mean = 0.1 * jax.random.normal(k3, (c,))
    var = 1.0 + 0.1 * jnp.abs(jax.random.normal(k4, (c,)))
    scale = (gamma / jnp.sqrt(var + eps)).astype(jnp.float32)
    shift = (beta - mean * scale).astype(jnp.float32)
    return scale.reshape(1, c), shift.reshape(1, c)


def init_params(key, ch_1, ch_2, r_2, ch_int, ch_out):
    # NOTE: weights in matmul layout (Cin, Cout); real PyTorch conv weights
    # (Cout, Cin, kh, kw) would need a transpose before use.
    ks = iter(jax.random.split(key, 40))

    def nrm(shape, s=0.1):
        return (s * jax.random.normal(next(ks), shape)).astype(jnp.float32)

    c3 = ch_1 + ch_2 + ch_int
    p = {}
    p["Wl_w"] = nrm((ch_1, ch_int)); p["Wl_b"] = nrm((1, ch_int), 0.05)
    p["Wl_bn"] = _bn_affine(next(ks), ch_int)
    p["Wg_w"] = nrm((ch_2, ch_int)); p["Wg_b"] = nrm((1, ch_int), 0.05)
    p["Wg_bn"] = _bn_affine(next(ks), ch_int)
    p["Up_w"] = nrm((ch_int // 2, ch_int)); p["Up_b"] = nrm((1, ch_int), 0.05)
    p["Up_bn"] = _bn_affine(next(ks), ch_int)
    p["ln1_w"] = 1.0 + nrm((1, ch_int * 3)); p["ln1_b"] = nrm((1, ch_int * 3))
    p["ln2_w"] = 1.0 + nrm((1, ch_int * 2)); p["ln2_b"] = nrm((1, ch_int * 2))
    p["ln3_w"] = 1.0 + nrm((1, c3)); p["ln3_b"] = nrm((1, c3))
    p["W3_w"] = nrm((ch_int * 3, ch_int)); p["W3_b"] = nrm((1, ch_int), 0.05)
    p["W3_bn"] = _bn_affine(next(ks), ch_int)
    p["W_w"] = nrm((ch_int * 2, ch_int)); p["W_b"] = nrm((1, ch_int), 0.05)
    p["W_bn"] = _bn_affine(next(ks), ch_int)
    p["sp_w7"] = nrm((7, 7, 2)).reshape(-1)          # flat [kh, kw, cin(max,avg)]
    sp_s, sp_b = _bn_affine(next(ks), 1)
    p["sp_bn"] = jnp.concatenate([sp_s.ravel(), sp_b.ravel()])
    p["se_w1"] = nrm((ch_2, ch_2 // r_2))
    p["se_w2"] = nrm((ch_2 // r_2, ch_2))
    p["ir_w1"] = nrm((3, 3, c3, c3), 0.05)
    p["ir_bn1"] = _bn_affine(next(ks), c3)
    p["ir_w2"] = nrm((c3, 4 * c3), 0.05)
    p["ir_w3"] = nrm((4 * c3, ch_out), 0.05)
    p["ir_bn3"] = _bn_affine(next(ks), ch_out)
    return p


def _fold_conv_bn(w, b, bn):
    scale, shift = bn
    return w * scale, b * scale + shift


def prepare_params(p, ch_1, ch_2, ch_int):
    """Fold eval-mode BN affines, conv biases and (X_f branch) the
    channels-first LayerNorm into the 1x1-conv weights."""
    ci = ch_int
    c3 = ch_1 + ch_2 + ch_int
    q = {}
    q["Wl_w"], q["Wl_b"] = _fold_conv_bn(p["Wl_w"], p["Wl_b"], p["Wl_bn"])
    q["Wg_w"], q["Wg_b"] = _fold_conv_bn(p["Wg_w"], p["Wg_b"], p["Wg_bn"])
    q["Up_w"], q["Up_b"] = _fold_conv_bn(p["Up_w"], p["Up_b"], p["Up_bn"])

    def fold_ln_conv(ln_w, ln_b, conv_w, conv_b, bn):
        wbn, bbn = _fold_conv_bn(conv_w, conv_b, bn)       # BN folded
        wff = ln_w.reshape(-1, 1) * wbn                    # LN weight folded
        bias_eff = ln_b @ wbn + bbn                        # LN bias folded
        colsum = jnp.sum(wff, axis=0, keepdims=True)       # for the -mu term
        return wff, colsum, bias_eff

    # with f: concat order [W_f, W_local, W_global] -> LN1 -> W3
    w3ff, q["W3_colsum"], q["W3_bias"] = fold_ln_conv(
        p["ln1_w"].ravel(), p["ln1_b"], p["W3_w"], p["W3_b"], p["W3_bn"])
    q["W3_blk"] = (w3ff[0:ci], w3ff[ci:2 * ci], w3ff[2 * ci:3 * ci])
    # without f: concat order [W_local, W_global] -> LN2 -> W
    wff, q["W_colsum"], q["W_bias"] = fold_ln_conv(
        p["ln2_w"].ravel(), p["ln2_b"], p["W_w"], p["W_b"], p["W_bn"])
    q["W_blk"] = (wff[0:ci], wff[ci:2 * ci])

    # LN3: constant channel-embedding matrices (diag(ln3_w) per concat part)
    lnw3 = p["ln3_w"].ravel()

    def embed(off, cx):
        e = jnp.zeros((cx, c3), jnp.float32)
        return e.at[jnp.arange(cx), off + jnp.arange(cx)].set(lnw3[off:off + cx])

    q["ln3_eg"] = embed(0, ch_2)                     # g part
    q["ln3_el"] = embed(ch_2, ch_1)                  # l part
    q["ln3_ef"] = embed(ch_2 + ch_1, ch_int)         # X_f part
    q["ln3_w"] = p["ln3_w"]
    q["ln3_b"] = p["ln3_b"]

    q["sp_w7"] = p["sp_w7"]; q["sp_bn"] = p["sp_bn"]
    q["se_w1"] = p["se_w1"]; q["se_w2"] = p["se_w2"]
    q["ir_w1"] = p["ir_w1"]; q["ir_bn1"] = p["ir_bn1"]
    q["ir_w2"] = p["ir_w2"]
    s3, t3 = p["ir_bn3"]                             # conv3 has no bias
    q["ir_w3"] = p["ir_w3"] * s3
    q["ir_b3"] = t3
    return q


# ---------------------------------------------------------------------------
# Full HFF_block forward
# ---------------------------------------------------------------------------
def hff_block_forward(q, l, g, f):
    # l: (N, ch_1, H, W), g: (N, ch_2, H, W), f: (N, ch_int//2, 2H, 2W) or None
    n, c1, hh, ww = l.shape
    c2 = g.shape[1]
    ci = q["Wl_w"].shape[1]
    ch_out = q["ir_w3"].shape[1]
    m = n * hh * ww

    l_nhwc = jnp.transpose(l, (0, 2, 3, 1))
    g_nhwc = jnp.transpose(g, (0, 2, 3, 1))
    l_flat = l_nhwc.reshape(m, c1)
    g_flat = g_nhwc.reshape(m, c2)

    if f is not None:
        f_nhwc = jnp.transpose(f, (0, 2, 3, 1))
        hf, wf = f.shape[2], f.shape[3]
        f_flat = f_nhwc.reshape(n * hf * wf, f.shape[1])
        up = conv1x1(f_flat, q["Up_w"], q["Up_b"], act="relu")
        up = up.reshape(n, hf, wf, ci)
        # AvgPool2d(2, stride=2) as XLA glue (reshape + mean)
        up = up.reshape(n, hf // 2, 2, wf // 2, 2, ci).mean(axis=(2, 4))
        shortcut = up.reshape(m, ci)
        x_f = xf_fused(l_flat, g_flat, shortcut, q["Wl_w"], q["Wl_b"],
                       q["Wg_w"], q["Wg_b"], q["W3_blk"],
                       q["W3_colsum"], q["W3_bias"])
    else:
        shortcut = None
        x_f = xf_fused(l_flat, g_flat, None, q["Wl_w"], q["Wl_b"],
                       q["Wg_w"], q["Wg_b"], q["W_blk"],
                       q["W_colsum"], q["W_bias"])

    l_att = spatial_attention(l_nhwc, q["sp_w7"], q["sp_bn"])
    g_att = channel_attention(g_nhwc, q["se_w1"], q["se_w2"])

    s1 = irmlp_stage1(g_att, l_att, x_f.reshape(n, hh, ww, ci), q)
    # shortcut add fused into the tail kernel (requires ch_int == ch_out, as in
    # the reference's broadcast-free addition)
    out = irmlp_tail(s1.reshape(m, c1 + c2 + ci), q["ir_w2"], q["ir_w3"],
                     q["ir_b3"], shortcut=shortcut)
    out = out.reshape(n, hh, ww, ch_out)
    return jnp.transpose(out, (0, 3, 1, 2))


if __name__ == "__main__":
    ch_1, ch_2, r_2, ch_int, ch_out = 8, 8, 4, 8, 8
    n, h, w = 2, 8, 8

    key = jax.random.PRNGKey(0)
    kp, kl, kg, kf = jax.random.split(key, 4)
    raw = init_params(kp, ch_1, ch_2, r_2, ch_int, ch_out)
    params = prepare_params(raw, ch_1, ch_2, ch_int)

    l = jax.random.normal(kl, (n, ch_1, h, w), jnp.float32)
    g = jax.random.normal(kg, (n, ch_2, h, w), jnp.float32)
    f = jax.random.normal(kf, (n, ch_int // 2, 2 * h, 2 * w), jnp.float32)

    out = hff_block_forward(params, l, g, f)
    out = jax.block_until_ready(out)
    assert out.shape == (n, ch_out, h, w), out.shape
    assert bool(jnp.all(jnp.isfinite(out)))

    # also exercise the f=None (norm2 / W) branch
    out2 = jax.block_until_ready(hff_block_forward(params, l, g, None))
    assert out2.shape == (n, ch_out, h, w), out2.shape
    assert bool(jnp.all(jnp.isfinite(out2)))

    print("KERNEL_OK")
</pallas_src>

<mosaic_0001>
module attributes {stable_mosaic.version = 11 : i64} {
  func.func @_conv1x1_kernel(%arg0: i32, %arg1: memref<512x4xf32, #tpu.memory_space<vmem>>, %arg2: memref<4x8xf32, #tpu.memory_space<vmem>>, %arg3: memref<1x8xf32, #tpu.memory_space<vmem>>, %arg4: memref<512x8xf32, #tpu.memory_space<vmem>>) attributes {dimension_semantics = [#tpu.dimension_semantics<parallel>], iteration_bounds = array<i64: 1>, scalar_prefetch = 0 : i64, scratch_operands = 0 : i64, tpu.core_type = #tpu.core_type<tc>, window_params = [{transform_indices = @transform_0, window_bounds = array<i64: 512, 4>}, {pipeline_mode = #tpu.pipeline_mode<synchronous>, transform_indices = @transform_1, window_bounds = array<i64: 4, 8>}, {pipeline_mode = #tpu.pipeline_mode<synchronous>, transform_indices = @transform_2, window_bounds = array<i64: 1, 8>}, {transform_indices = @transform_3, window_bounds = array<i64: 512, 8>}]} {
    %c0 = arith.constant 0 : index
    %c0_0 = arith.constant 0 : index
    %0 = vector.load %arg1[%c0, %c0_0] : memref<512x4xf32, #tpu.memory_space<vmem>>, vector<512x4xf32>
    %1 = arith.truncf %0 : vector<512x4xf32> to vector<512x4xbf16>
    %c0_1 = arith.constant 0 : index
    %c0_2 = arith.constant 0 : index
    %2 = vector.load %arg2[%c0_1, %c0_2] : memref<4x8xf32, #tpu.memory_space<vmem>>, vector<4x8xf32>
    %3 = arith.truncf %2 : vector<4x8xf32> to vector<4x8xbf16>
    %cst = arith.constant dense<0.000000e+00> : vector<512x8xf32>
    %4 = tpu.matmul %1, %3, %cst {dimension_numbers = #tpu.dot_dimension_numbers<[1], [0], [0], [1], [0, 0, 1, 1], [], []>} : vector<512x4xbf16>, vector<4x8xbf16>, vector<512x8xf32> -> vector<512x8xf32>
    %c0_3 = arith.constant 0 : index
    %c0_4 = arith.constant 0 : index
    %5 = vector.load %arg3[%c0_3, %c0_4] : memref<1x8xf32, #tpu.memory_space<vmem>>, vector<1x8xf32>
    %6 = vector.broadcast %5 : vector<1x8xf32> to vector<512x8xf32>
    %7 = arith.addf %4, %6 : vector<512x8xf32>
    %cst_5 = arith.constant 0.000000e+00 : f32
    %8 = vector.broadcast %cst_5 : f32 to vector<512x8xf32>
    %9 = arith.maximumf %7, %8 : vector<512x8xf32>
    %c0_6 = arith.constant 0 : index
    %c0_7 = arith.constant 0 : index
    %10 = vector.load %arg4[%c0_6, %c0_7] : memref<512x8xf32, #tpu.memory_space<vmem>>, vector<512x8xf32>
    tpu.vector_store %arg4[%c0_6, %c0_7], %9 {strides = array<i32>} : memref<512x8xf32, #tpu.memory_space<vmem>>, vector<512x8xf32>,
    return
  }
  func.func @transform_0(%arg0: i32) -> (i32, i32) {
    %c0_i32 = arith.constant 0 : i32
    %c0_i32_0 = arith.constant 0 : i32
    return %arg0, %c0_i32 : i32, i32
  }
  func.func @transform_1(%arg0: i32) -> (i32, i32) {
    %c0_i32 = arith.constant 0 : i32
    %c0_i32_0 = arith.constant 0 : i32
    %c0_i32_1 = arith.constant 0 : i32
    return %c0_i32, %c0_i32_0 : i32, i32
  }
  func.func @transform_2(%arg0: i32) -> (i32, i32) {
    %c0_i32 = arith.constant 0 : i32
    %c0_i32_0 = arith.constant 0 : i32
    %c0_i32_1 = arith.constant 0 : i32
    return %c0_i32, %c0_i32_0 : i32, i32
  }
  func.func @transform_3(%arg0: i32) -> (i32, i32) {
    %c0_i32 = arith.constant 0 : i32
    %c0_i32_0 = arith.constant 0 : i32
    return %arg0, %c0_i32 : i32, i32
  }
}

</mosaic_0001>

<bundles_post_ra>
// kernel: tpu_custom_call.1
= control target key start
LH: loop header
LB: loop body
LE: loop exit
PB: predicated region body
PF: predicated region fallthrough
CT: control target
= control target key end

     0   :  { %vm217_vm0 = vcmask 1041408   ;;  %vm120_vm1 = vcmask 31744   ;;  %vm574_vm2 = vcmask 64512   ;;  %s1351_s1 = inlined_call_operand.vmem [shape: f32[4,8], index: 1, kind: input, shape index: {}]   ;;  %s1352_s0 = inlined_call_operand.vmem [shape: f32[512,4], index: 0, kind: input, shape index: {}]   ;;  %s1353_s2 = inlined_call_operand.vmem [shape: f32[1,8], index: 2, kind: input, shape index: {}]   ;;  %s1354_s3 = inlined_call_operand.vmem [shape: f32[512,8], index: 3, kind: output, shape index: {}]  }
   0x1   :  { %v111_v0 = vld [vmem:[%s1351_s1] sm:$0xf]  ;;  %v16_v2 = vld [vmem:[%s1352_s0 + $0x8] sm:$0xff]  ;;  %v17_v7 = vld [vmem:[%s1352_s0 + $0x10] sm:$0xff] }
   0x2   :  { %v15_v1 = vld [vmem:[%s1352_s0] sm:$0xff]  ;;  %v112_v3 = vpack.c.bf16 %v111_v0, %v111_v0  ;;  %v48_v6 = vld [vmem:[%s1352_s0 + $0x108] sm:$0xff]  ;;  %v18_v9 = vld [vmem:[%s1352_s0 + $0x18] sm:$0xff] }
   0x3   :  { %v79_v4 = vpack.c.bf16 %v16_v2, %v15_v1  ;;  %v47_v5 = vld [vmem:[%s1352_s0 + $0x100] sm:$0xff]  ;;  %v49_v10 = vld [vmem:[%s1352_s0 + $0x110] sm:$0xff]  ;;  %v50_v11 = vld [vmem:[%s1352_s0 + $0x118] sm:$0xff]  ;;  %v80_v13 = vpack.c.bf16 %v18_v9, %v17_v7 }
   0x4   :  { %v95_v8 = vpack.c.bf16 %v48_v6, %v47_v5  ;;  %777 = vmatprep.subr.msk.bf16.mxu0 %vm217_vm0, %v112_v3  ;;  %778 = vmatprep.subr.msk.bf16.mxu1 %vm217_vm0, %v112_v3  ;;  %v219_v12 = vsel %vm217_vm0, %v112_v3, 0  ;;  %v96_v14 = vpack.c.bf16 %v50_v11, %v49_v10  ;;  %v19_v15 = vld [vmem:[%s1352_s0 + $0x20] sm:$0xff]  ;;  %v20_v16 = vld [vmem:[%s1352_s0 + $0x28] sm:$0xff]  ;;  %v21_v21 = vld [vmem:[%s1352_s0 + $0x30] sm:$0xff] }
   0x5   :  { %v51_v17 = vld [vmem:[%s1352_s0 + $0x120] sm:$0xff]  ;;  %710 = vmatpush3.bf16.msra.mxu0 %v219_v12  ;;  %776 = vmatpush3.bf16.msra.mxu1 %v219_v12  ;;  %v81_v18 = vpack.c.bf16 %v20_v16, %v19_v15  ;;  %v52_v19 = vld [vmem:[%s1352_s0 + $0x128] sm:$0xff]  ;;  %v22_v22 = vld [vmem:[%s1352_s0 + $0x38] sm:$0xff] }
   0x6   :  { %711 = vmatprep.mubr.msk.bf16.mxu0 %vm120_vm1, %v79_v4  ;;  %743 = vmatprep.mubr.msk.bf16.mxu1 %vm120_vm1, %v95_v8  ;;  %v97_v20 = vpack.c.bf16 %v52_v19, %v51_v17  ;;  %v53_v23 = vld [vmem:[%s1352_s0 + $0x130] sm:$0xff]  ;;  %v54_v24 = vld [vmem:[%s1352_s0 + $0x138] sm:$0xff]  ;;  %v23_v25 = vld [vmem:[%s1352_s0 + $0x40] sm:$0xff]  ;;  %v82_v29 = vpack.c.bf16 %v22_v22, %v21_v21 }
   0x7   :  { %v24_v26 = vld [vmem:[%s1352_s0 + $0x48] sm:$0xff]  ;;  %v55_v27 = vld [vmem:[%s1352_s0 + $0x140] sm:$0xff]  ;;  %v98_v30 = vpack.c.bf16 %v54_v24, %v53_v23  ;;  %v25_v33 = vld [vmem:[%s1352_s0 + $0x50] sm:$0xff] }
   0x8   :  { %712 = vmatmul.mubr.msk.bf16.vlgmr.msra.gmra.mrb[0].mxu0 %vm120_vm1, %v80_v13  ;;  %744 = vmatmul.mubr.msk.bf16.vlgmr.msra.gmra.mrb[0].mxu1 %vm120_vm1, %v96_v14  ;;  %v56_v28 = vld [vmem:[%s1352_s0 + $0x148] sm:$0xff]  ;;  %v83_v31 = vpack.c.bf16 %v24_v26, %v23_v25  ;;  %v26_v34 = vld [vmem:[%s1352_s0 + $0x58] sm:$0xff]  ;;  %v57_v35 = vld [vmem:[%s1352_s0 + $0x150] sm:$0xff] }
   0x9   :  { %715 = vmatprep.mubr.msk.bf16.mxu0 %vm120_vm1, %v81_v18  ;;  %747 = vmatprep.mubr.msk.bf16.mxu1 %vm120_vm1, %v97_v20  ;;  %v99_v32 = vpack.c.bf16 %v56_v28, %v55_v27  ;;  %v58_v36 = vld [vmem:[%s1352_s0 + $0x158] sm:$0xff]  ;;  %v27_v37 = vld [vmem:[%s1352_s0 + $0x60] sm:$0xff]  ;;  %v28_v38 = vld [vmem:[%s1352_s0 + $0x68] sm:$0xff]  ;;  %v84_v41 = vpack.c.bf16 %v26_v34, %v25_v33 }
   0xa   :  { %v59_v39 = vld [vmem:[%s1352_s0 + $0x160] sm:$0xff]  ;;  %v60_v40 = vld [vmem:[%s1352_s0 + $0x168] sm:$0xff]  ;;  %v100_v42 = vpack.c.bf16 %v58_v36, %v57_v35  ;;  %v85_v43 = vpack.c.bf16 %v28_v38, %v27_v37  ;;  %v29_v45 = vld [vmem:[%s1352_s0 + $0x70] sm:$0xff] }
   0xb   :  { %v101_v44 = vpack.c.bf16 %v60_v40, %v59_v39  ;;  %v30_v46 = vld [vmem:[%s1352_s0 + $0x78] sm:$0xff]  ;;  %v61_v47 = vld [vmem:[%s1352_s0 + $0x170] sm:$0xff]  ;;  %v31_v49 = vld [vmem:[%s1352_s0 + $0x80] sm:$0xff] }
   0xc   :  { %v62_v48 = vld [vmem:[%s1352_s0 + $0x178] sm:$0xff]  ;;  %v32_v50 = vld [vmem:[%s1352_s0 + $0x88] sm:$0xff]  ;;  %v63_v51 = vld [vmem:[%s1352_s0 + $0x180] sm:$0xff]  ;;  %v86_v53 = vpack.c.bf16 %v30_v46, %v29_v45 }
   0xd   :  { %v64_v52 = vld [vmem:[%s1352_s0 + $0x188] sm:$0xff]  ;;  %v102_v54 = vpack.c.bf16 %v62_v48, %v61_v47  ;;  %v87_v55 = vpack.c.bf16 %v32_v50, %v31_v49  ;;  %v33_v57 = vld [vmem:[%s1352_s0 + $0x90] sm:$0xff]  ;;  %v34_v58 = vld [vmem:[%s1352_s0 + $0x98] sm:$0xff] }
   0xe   :  { %v103_v56 = vpack.c.bf16 %v64_v52, %v63_v51  ;;  %v65_v59 = vld [vmem:[%s1352_s0 + $0x190] sm:$0xff]  ;;  %v66_v60 = vld [vmem:[%s1352_s0 + $0x198] sm:$0xff]  ;;  %v35_v61 = vld [vmem:[%s1352_s0 + $0xa0] sm:$0xff]  ;;  %v88_v1 = vpack.c.bf16 %v34_v58, %v33_v57 }
   0xf   :  { %v36_v62 = vld [vmem:[%s1352_s0 + $0xa8] sm:$0xff]  ;;  %v67_v63 = vld [vmem:[%s1352_s0 + $0x1a0] sm:$0xff]  ;;  %v104_v2 = vpack.c.bf16 %v66_v60, %v65_v59  ;;  %v37_v5 = vld [vmem:[%s1352_s0 + $0xb0] sm:$0xff] }
  0x10   :  { %716 = vmatmul.mubr.msk.bf16.gmra.mrb[4].mxu0 %vm120_vm1, %v82_v29  ;;  %748 = vmatmul.mubr.msk.bf16.gmra.mrb[4].mxu1 %vm120_vm1, %v98_v30  ;;  %v68_v0 = vld [vmem:[%s1352_s0 + $0x1a8] sm:$0xff]  ;;  %v89_v3 = vpack.c.bf16 %v36_v62, %v35_v61  ;;  %v38_v6 = vld [vmem:[%s1352_s0 + $0xb8] sm:$0xff]  ;;  %v69_v7 = vld [vmem:[%s1352_s0 + $0x1b0] sm:$0xff] }
  0x11   :  { %719 = vmatprep.mubr.msk.bf16.mxu0 %vm120_vm1, %v83_v31  ;;  %751 = vmatprep.mubr.msk.bf16.mxu1 %vm120_vm1, %v99_v32  ;;  %v105_v4 = vpack.c.bf16 %v68_v0, %v67_v63  ;;  %v70_v8 = vld [vmem:[%s1352_s0 + $0x1b8] sm:$0xff]  ;;  %v39_v9 = vld [vmem:[%s1352_s0 + $0xc0] sm:$0xff]  ;;  %v40_v10 = vld [vmem:[%s1352_s0 + $0xc8] sm:$0xff]  ;;  %v90_v13 = vpack.c.bf16 %v38_v6, %v37_v5 }
  0x12   :  { %v71_v11 = vld [vmem:[%s1352_s0 + $0x1c0] sm:$0xff]  ;;  %v72_v12 = vld [vmem:[%s1352_s0 + $0x1c8] sm:$0xff]  ;;  %v106_v14 = vpack.c.bf16 %v70_v8, %v69_v7  ;;  %v91_v15 = vpack.c.bf16 %v40_v10, %v39_v9  ;;  %v41_v17 = vld [vmem:[%s1352_s0 + $0xd0] sm:$0xff] }
  0x13   :  { %v107_v16 = vpack.c.bf16 %v72_v12, %v71_v11  ;;  %v42_v18 = vld [vmem:[%s1352_s0 + $0xd8] sm:$0xff]  ;;  %v73_v19 = vld [vmem:[%s1352_s0 + $0x1d0] sm:$0xff]  ;;  %v43_v21 = vld [vmem:[%s1352_s0 + $0xe0] sm:$0xff] }
  0x14   :  { %v74_v20 = vld [vmem:[%s1352_s0 + $0x1d8] sm:$0xff]  ;;  %v44_v22 = vld [vmem:[%s1352_s0 + $0xe8] sm:$0xff]  ;;  %v75_v23 = vld [vmem:[%s1352_s0 + $0x1e0] sm:$0xff]  ;;  %v92_v25 = vpack.c.bf16 %v42_v18, %v41_v17 }
  0x15   :  { %v76_v24 = vld [vmem:[%s1352_s0 + $0x1e8] sm:$0xff]  ;;  %v108_v26 = vpack.c.bf16 %v74_v20, %v73_v19  ;;  %v93_v27 = vpack.c.bf16 %v44_v22, %v43_v21  ;;  %v45_v29 = vld [vmem:[%s1352_s0 + $0xf0] sm:$0xff]  ;;  %v46_v30 = vld [vmem:[%s1352_s0 + $0xf8] sm:$0xff] }
  0x16   :  { %v109_v28 = vpack.c.bf16 %v76_v24, %v75_v23  ;;  %v77_v31 = vld [vmem:[%s1352_s0 + $0x1f0] sm:$0xff]  ;;  %v78_v32 = vld [vmem:[%s1352_s0 + $0x1f8] sm:$0xff]  ;;  %v94_v33 = vpack.c.bf16 %v46_v30, %v45_v29  ;;  %v1029_v35 = vld [vmem:[%s1353_s2] ss:$0 sm:$0xff] }
  0x17   :  { %v110_v34 = vpack.c.bf16 %v78_v32, %v77_v31 }
  0x18   :  { %720 = vmatmul.mubr.msk.bf16.gmra.mrb[8].mxu0 %vm120_vm1, %v84_v41  ;;  %752 = vmatmul.mubr.msk.bf16.gmra.mrb[8].mxu1 %vm120_vm1, %v100_v42 }
  0x19   :  { %723 = vmatprep.mubr.msk.bf16.mxu0 %vm120_vm1, %v85_v43  ;;  %755 = vmatprep.mubr.msk.bf16.mxu1 %vm120_vm1, %v101_v44 }
  0x20   :  { %724 = vmatmul.mubr.msk.bf16.gmra.mrb[12].mxu0 %vm120_vm1, %v86_v53  ;;  %756 = vmatmul.mubr.msk.bf16.gmra.mrb[12].mxu1 %vm120_vm1, %v102_v54 }
  0x21   :  { %727 = vmatprep.mubr.msk.bf16.mxu0 %vm120_vm1, %v87_v55  ;;  %759 = vmatprep.mubr.msk.bf16.mxu1 %vm120_vm1, %v103_v56 }
  0x28   :  { %728 = vmatmul.mubr.msk.bf16.gmra.mrb[16].mxu0 %vm120_vm1, %v88_v1  ;;  %760 = vmatmul.mubr.msk.bf16.gmra.mrb[16].mxu1 %vm120_vm1, %v104_v2 }
  0x29   :  { %731 = vmatprep.mubr.msk.bf16.mxu0 %vm120_vm1, %v89_v3  ;;  %763 = vmatprep.mubr.msk.bf16.mxu1 %vm120_vm1, %v105_v4 }
  0x30   :  { %732 = vmatmul.mubr.msk.bf16.gmra.mrb[20].mxu0 %vm120_vm1, %v90_v13  ;;  %764 = vmatmul.mubr.msk.bf16.gmra.mrb[20].mxu1 %vm120_vm1, %v106_v14 }
  0x31   :  { %735 = vmatprep.mubr.msk.bf16.mxu0 %vm120_vm1, %v91_v15  ;;  %767 = vmatprep.mubr.msk.bf16.mxu1 %vm120_vm1, %v107_v16 }
  0x38   :  { %736 = vmatmul.mubr.msk.bf16.gmra.mrb[24].mxu0 %vm120_vm1, %v92_v25  ;;  %768 = vmatmul.mubr.msk.bf16.gmra.mrb[24].mxu1 %vm120_vm1, %v108_v26 }
  0x39   :  { %739 = vmatprep.mubr.msk.bf16.mxu0 %vm120_vm1, %v93_v27  ;;  %771 = vmatprep.mubr.msk.bf16.mxu1 %vm120_vm1, %v109_v28 }
  0x40   :  { %740 = vmatmul.mubr.msk.bf16.gmra.mrb[28].mxu0 %vm120_vm1, %v94_v33  ;;  %772 = vmatmul.mubr.msk.bf16.gmra.mrb[28].mxu1 %vm120_vm1, %v110_v34 }
  0xdb   :  { %v713_v36 = vpop.f32.mrb[0].mxu0  ;;  %v745_v37 = vpop.f32.mrb[0].mxu1 }
  0xdc   :  { %v264_v38 = vadd.f32 %v713_v36, %v1029_v35  ;;  %v392_v39 = vadd.f32 %v745_v37, %v1029_v35  ;;  %v255_v40 = vpop.f32.mrb[1].mxu0  ;;  %v383_v41 = vpop.f32.mrb[1].mxu1 }
  0xdd   :  { %v256_v42 = vadd.f32 %v1029_v35, %v255_v40  ;;  %v384_v43 = vadd.f32 %v1029_v35, %v383_v41  ;;  %v714_v44 = vpop.f32.mrb[2].mxu0  ;;  %v746_v45 = vpop.f32.mrb[2].mxu1 }
  0xde   :  { %v512_v46 = vmax.f32 %v264_v38, 0.0  ;;  %v544_v47 = vmax.f32 %v392_v39, 0.0  ;;  %v267_v48 = vadd.f32 %v714_v44, %v1029_v35  ;;  %v395_v49 = vadd.f32 %v746_v45, %v1029_v35  ;;  %v258_v50 = vpop.f32.mrb[3].mxu0  ;;  %v386_v51 = vpop.f32.mrb[3].mxu1 }
  0xdf   :  { %v510_v52 = vmax.f32 %v256_v42, 0.0  ;;  %v542_v53 = vmax.f32 %v384_v43, 0.0  ;;  %v259_v54 = vadd.f32 %v1029_v35, %v258_v50  ;;  %v387_v55 = vadd.f32 %v1029_v35, %v386_v51 }
  0xe0   :  { %577 = vst.msk [vmem:[%s1354_s3 + $0x10] sm:$0xff] %vm574_vm2, %v512_v46  ;;  %609 = vst.msk [vmem:[%s1354_s3 + $0x110] sm:$0xff] %vm574_vm2, %v544_v47  ;;  %v513_v56 = vmax.f32 %v267_v48, 0.0  ;;  %v545_v57 = vmax.f32 %v395_v49, 0.0 }
  0xe1   :  { %575 = vst.msk [vmem:[%s1354_s3] sm:$0xff] %vm574_vm2, %v510_v52  ;;  %607 = vst.msk [vmem:[%s1354_s3 + $0x100] sm:$0xff] %vm574_vm2, %v542_v53  ;;  %v511_v58 = vmax.f32 %v259_v54, 0.0  ;;  %v543_v59 = vmax.f32 %v387_v55, 0.0 }
  0xe2   :  { %578 = vst.msk [vmem:[%s1354_s3 + $0x18] sm:$0xff] %vm574_vm2, %v513_v56  ;;  %610 = vst.msk [vmem:[%s1354_s3 + $0x118] sm:$0xff] %vm574_vm2, %v545_v57 }
  0xe3   :  { %576 = vst.msk [vmem:[%s1354_s3 + $0x8] sm:$0xff] %vm574_vm2, %v511_v58  ;;  %608 = vst.msk [vmem:[%s1354_s3 + $0x108] sm:$0xff] %vm574_vm2, %v543_v59  ;;  %v717_v60 = vpop.f32.mrb[4].mxu0  ;;  %v749_v61 = vpop.f32.mrb[4].mxu1 }
  0xe4   :  { %v280_v62 = vadd.f32 %v717_v60, %v1029_v35  ;;  %v408_v63 = vadd.f32 %v749_v61, %v1029_v35  ;;  %v271_v0 = vpop.f32.mrb[5].mxu0  ;;  %v399_v1 = vpop.f32.mrb[5].mxu1 }
  0xe5   :  { %v272_v2 = vadd.f32 %v1029_v35, %v271_v0  ;;  %v400_v3 = vadd.f32 %v1029_v35, %v399_v1  ;;  %v718_v4 = vpop.f32.mrb[6].mxu0  ;;  %v750_v5 = vpop.f32.mrb[6].mxu1 }
  0xe6   :  { %v516_v6 = vmax.f32 %v280_v62, 0.0  ;;  %v548_v7 = vmax.f32 %v408_v63, 0.0  ;;  %v283_v8 = vadd.f32 %v718_v4, %v1029_v35  ;;  %v411_v9 = vadd.f32 %v750_v5, %v1029_v35  ;;  %v274_v10 = vpop.f32.mrb[7].mxu0  ;;  %v402_v11 = vpop.f32.mrb[7].mxu1 }
  0xe7   :  { %v514_v12 = vmax.f32 %v272_v2, 0.0  ;;  %v546_v13 = vmax.f32 %v400_v3, 0.0  ;;  %v275_v14 = vadd.f32 %v1029_v35, %v274_v10  ;;  %v403_v15 = vadd.f32 %v1029_v35, %v402_v11 }
  0xe8   :  { %581 = vst.msk [vmem:[%s1354_s3 + $0x30] sm:$0xff] %vm574_vm2, %v516_v6  ;;  %613 = vst.msk [vmem:[%s1354_s3 + $0x130] sm:$0xff] %vm574_vm2, %v548_v7  ;;  %v517_v16 = vmax.f32 %v283_v8, 0.0  ;;  %v549_v17 = vmax.f32 %v411_v9, 0.0 }
  0xe9   :  { %579 = vst.msk [vmem:[%s1354_s3 + $0x20] sm:$0xff] %vm574_vm2, %v514_v12  ;;  %611 = vst.msk [vmem:[%s1354_s3 + $0x120] sm:$0xff] %vm574_vm2, %v546_v13  ;;  %v515_v18 = vmax.f32 %v275_v14, 0.0  ;;  %v547_v19 = vmax.f32 %v403_v15, 0.0 }
  0xea   :  { %582 = vst.msk [vmem:[%s1354_s3 + $0x38] sm:$0xff] %vm574_vm2, %v517_v16  ;;  %614 = vst.msk [vmem:[%s1354_s3 + $0x138] sm:$0xff] %vm574_vm2, %v549_v17 }
  0xeb   :  { %580 = vst.msk [vmem:[%s1354_s3 + $0x28] sm:$0xff] %vm574_vm2, %v515_v18  ;;  %612 = vst.msk [vmem:[%s1354_s3 + $0x128] sm:$0xff] %vm574_vm2, %v547_v19  ;;  %v721_v20 = vpop.f32.mrb[8].mxu0  ;;  %v753_v21 = vpop.f32.mrb[8].mxu1 }
  0xec   :  { %v296_v22 = vadd.f32 %v721_v20, %v1029_v35  ;;  %v424_v23 = vadd.f32 %v753_v21, %v1029_v35  ;;  %v287_v24 = vpop.f32.mrb[9].mxu0  ;;  %v415_v25 = vpop.f32.mrb[9].mxu1 }
  0xed   :  { %v288_v26 = vadd.f32 %v1029_v35, %v287_v24  ;;  %v416_v27 = vadd.f32 %v1029_v35, %v415_v25  ;;  %v722_v28 = vpop.f32.mrb[10].mxu0  ;;  %v754_v29 = vpop.f32.mrb[10].mxu1 }
  0xee   :  { %v520_v30 = vmax.f32 %v296_v22, 0.0  ;;  %v552_v31 = vmax.f32 %v424_v23, 0.0  ;;  %v299_v32 = vadd.f32 %v722_v28, %v1029_v35  ;;  %v427_v33 = vadd.f32 %v754_v29, %v1029_v35  ;;  %v290_v34 = vpop.f32.mrb[11].mxu0  ;;  %v418_v36 = vpop.f32.mrb[11].mxu1 }
  0xef   :  { %v518_v37 = vmax.f32 %v288_v26, 0.0  ;;  %v550_v38 = vmax.f32 %v416_v27, 0.0  ;;  %v291_v39 = vadd.f32 %v1029_v35, %v290_v34  ;;  %v419_v40 = vadd.f32 %v1029_v35, %v418_v36 }
  0xf0   :  { %585 = vst.msk [vmem:[%s1354_s3 + $0x50] sm:$0xff] %vm574_vm2, %v520_v30  ;;  %617 = vst.msk [vmem:[%s1354_s3 + $0x150] sm:$0xff] %vm574_vm2, %v552_v31  ;;  %v521_v41 = vmax.f32 %v299_v32, 0.0  ;;  %v553_v42 = vmax.f32 %v427_v33, 0.0 }
  0xf1   :  { %583 = vst.msk [vmem:[%s1354_s3 + $0x40] sm:$0xff] %vm574_vm2, %v518_v37  ;;  %615 = vst.msk [vmem:[%s1354_s3 + $0x140] sm:$0xff] %vm574_vm2, %v550_v38  ;;  %v519_v43 = vmax.f32 %v291_v39, 0.0  ;;  %v551_v44 = vmax.f32 %v419_v40, 0.0 }
  0xf2   :  { %586 = vst.msk [vmem:[%s1354_s3 + $0x58] sm:$0xff] %vm574_vm2, %v521_v41  ;;  %618 = vst.msk [vmem:[%s1354_s3 + $0x158] sm:$0xff] %vm574_vm2, %v553_v42 }
  0xf3   :  { %584 = vst.msk [vmem:[%s1354_s3 + $0x48] sm:$0xff] %vm574_vm2, %v519_v43  ;;  %616 = vst.msk [vmem:[%s1354_s3 + $0x148] sm:$0xff] %vm574_vm2, %v551_v44  ;;  %v725_v45 = vpop.f32.mrb[12].mxu0  ;;  %v757_v46 = vpop.f32.mrb[12].mxu1 }
  0xf4   :  { %v312_v47 = vadd.f32 %v725_v45, %v1029_v35  ;;  %v440_v48 = vadd.f32 %v757_v46, %v1029_v35  ;;  %v303_v49 = vpop.f32.mrb[13].mxu0  ;;  %v431_v50 = vpop.f32.mrb[13].mxu1 }
  0xf5   :  { %v304_v51 = vadd.f32 %v1029_v35, %v303_v49  ;;  %v432_v52 = vadd.f32 %v1029_v35, %v431_v50  ;;  %v726_v53 = vpop.f32.mrb[14].mxu0  ;;  %v758_v54 = vpop.f32.mrb[14].mxu1 }
  0xf6   :  { %v524_v55 = vmax.f32 %v312_v47, 0.0  ;;  %v556_v56 = vmax.f32 %v440_v48, 0.0  ;;  %v315_v57 = vadd.f32 %v726_v53, %v1029_v35  ;;  %v443_v58 = vadd.f32 %v758_v54, %v1029_v35  ;;  %v306_v59 = vpop.f32.mrb[15].mxu0  ;;  %v434_v60 = vpop.f32.mrb[15].mxu1 }
  0xf7   :  { %v522_v61 = vmax.f32 %v304_v51, 0.0  ;;  %v554_v62 = vmax.f32 %v432_v52, 0.0  ;;  %v307_v63 = vadd.f32 %v1029_v35, %v306_v59  ;;  %v435_v0 = vadd.f32 %v1029_v35, %v434_v60 }
  0xf8   :  { %589 = vst.msk [vmem:[%s1354_s3 + $0x70] sm:$0xff] %vm574_vm2, %v524_v55  ;;  %621 = vst.msk [vmem:[%s1354_s3 + $0x170] sm:$0xff] %vm574_vm2, %v556_v56  ;;  %v525_v1 = vmax.f32 %v315_v57, 0.0  ;;  %v557_v2 = vmax.f32 %v443_v58, 0.0 }
  0xf9   :  { %587 = vst.msk [vmem:[%s1354_s3 + $0x60] sm:$0xff] %vm574_vm2, %v522_v61  ;;  %619 = vst.msk [vmem:[%s1354_s3 + $0x160] sm:$0xff] %vm574_vm2, %v554_v62  ;;  %v523_v3 = vmax.f32 %v307_v63, 0.0  ;;  %v555_v4 = vmax.f32 %v435_v0, 0.0 }
  0xfa   :  { %590 = vst.msk [vmem:[%s1354_s3 + $0x78] sm:$0xff] %vm574_vm2, %v525_v1  ;;  %622 = vst.msk [vmem:[%s1354_s3 + $0x178] sm:$0xff] %vm574_vm2, %v557_v2 }
  0xfb   :  { %588 = vst.msk [vmem:[%s1354_s3 + $0x68] sm:$0xff] %vm574_vm2, %v523_v3  ;;  %620 = vst.msk [vmem:[%s1354_s3 + $0x168] sm:$0xff] %vm574_vm2, %v555_v4  ;;  %v729_v5 = vpop.f32.mrb[16].mxu0  ;;  %v761_v6 = vpop.f32.mrb[16].mxu1 }
  0xfc   :  { %v328_v7 = vadd.f32 %v729_v5, %v1029_v35  ;;  %v456_v8 = vadd.f32 %v761_v6, %v1029_v35  ;;  %v319_v9 = vpop.f32.mrb[17].mxu0  ;;  %v447_v10 = vpop.f32.mrb[17].mxu1 }
  0xfd   :  { %v320_v11 = vadd.f32 %v1029_v35, %v319_v9  ;;  %v448_v12 = vadd.f32 %v1029_v35, %v447_v10  ;;  %v730_v13 = vpop.f32.mrb[18].mxu0  ;;  %v762_v14 = vpop.f32.mrb[18].mxu1 }
  0xfe   :  { %v528_v15 = vmax.f32 %v328_v7, 0.0  ;;  %v560_v16 = vmax.f32 %v456_v8, 0.0  ;;  %v331_v17 = vadd.f32 %v730_v13, %v1029_v35  ;;  %v459_v18 = vadd.f32 %v762_v14, %v1029_v35  ;;  %v322_v19 = vpop.f32.mrb[19].mxu0  ;;  %v450_v20 = vpop.f32.mrb[19].mxu1 }
  0xff   :  { %v526_v21 = vmax.f32 %v320_v11, 0.0  ;;  %v558_v22 = vmax.f32 %v448_v12, 0.0  ;;  %v323_v23 = vadd.f32 %v1029_v35, %v322_v19  ;;  %v451_v24 = vadd.f32 %v1029_v35, %v450_v20 }
 0x100   :  { %593 = vst.msk [vmem:[%s1354_s3 + $0x90] sm:$0xff] %vm574_vm2, %v528_v15  ;;  %625 = vst.msk [vmem:[%s1354_s3 + $0x190] sm:$0xff] %vm574_vm2, %v560_v16  ;;  %v529_v25 = vmax.f32 %v331_v17, 0.0  ;;  %v561_v26 = vmax.f32 %v459_v18, 0.0 }
 0x101   :  { %591 = vst.msk [vmem:[%s1354_s3 + $0x80] sm:$0xff] %vm574_vm2, %v526_v21  ;;  %623 = vst.msk [vmem:[%s1354_s3 + $0x180] sm:$0xff] %vm574_vm2, %v558_v22  ;;  %v527_v27 = vmax.f32 %v323_v23, 0.0  ;;  %v559_v28 = vmax.f32 %v451_v24, 0.0 }
 0x102   :  { %594 = vst.msk [vmem:[%s1354_s3 + $0x98] sm:$0xff] %vm574_vm2, %v529_v25  ;;  %626 = vst.msk [vmem:[%s1354_s3 + $0x198] sm:$0xff] %vm574_vm2, %v561_v26 }
 0x103   :  { %592 = vst.msk [vmem:[%s1354_s3 + $0x88] sm:$0xff] %vm574_vm2, %v527_v27  ;;  %624 = vst.msk [vmem:[%s1354_s3 + $0x188] sm:$0xff] %vm574_vm2, %v559_v28  ;;  %v733_v29 = vpop.f32.mrb[20].mxu0  ;;  %v765_v30 = vpop.f32.mrb[20].mxu1 }
 0x104   :  { %v344_v31 = vadd.f32 %v733_v29, %v1029_v35  ;;  %v472_v32 = vadd.f32 %v765_v30, %v1029_v35  ;;  %v335_v33 = vpop.f32.mrb[21].mxu0  ;;  %v463_v34 = vpop.f32.mrb[21].mxu1 }
 0x105   :  { %v336_v36 = vadd.f32 %v1029_v35, %v335_v33  ;;  %v464_v37 = vadd.f32 %v1029_v35, %v463_v34  ;;  %v734_v38 = vpop.f32.mrb[22].mxu0  ;;  %v766_v39 = vpop.f32.mrb[22].mxu1 }
 0x106   :  { %v532_v40 = vmax.f32 %v344_v31, 0.0  ;;  %v564_v41 = vmax.f32 %v472_v32, 0.0  ;;  %v347_v42 = vadd.f32 %v734_v38, %v1029_v35  ;;  %v475_v43 = vadd.f32 %v766_v39, %v1029_v35  ;;  %v338_v44 = vpop.f32.mrb[23].mxu0  ;;  %v466_v45 = vpop.f32.mrb[23].mxu1 }
 0x107   :  { %v530_v46 = vmax.f32 %v336_v36, 0.0  ;;  %v562_v47 = vmax.f32 %v464_v37, 0.0  ;;  %v339_v48 = vadd.f32 %v1029_v35, %v338_v44  ;;  %v467_v49 = vadd.f32 %v1029_v35, %v466_v45 }
 0x108   :  { %597 = vst.msk [vmem:[%s1354_s3 + $0xb0] sm:$0xff] %vm574_vm2, %v532_v40  ;;  %629 = vst.msk [vmem:[%s1354_s3 + $0x1b0] sm:$0xff] %vm574_vm2, %v564_v41  ;;  %v533_v50 = vmax.f32 %v347_v42, 0.0  ;;  %v565_v51 = vmax.f32 %v475_v43, 0.0 }
 0x109   :  { %595 = vst.msk [vmem:[%s1354_s3 + $0xa0] sm:$0xff] %vm574_vm2, %v530_v46  ;;  %627 = vst.msk [vmem:[%s1354_s3 + $0x1a0] sm:$0xff] %vm574_vm2, %v562_v47  ;;  %v531_v52 = vmax.f32 %v339_v48, 0.0  ;;  %v563_v53 = vmax.f32 %v467_v49, 0.0 }
 0x10a   :  { %598 = vst.msk [vmem:[%s1354_s3 + $0xb8] sm:$0xff] %vm574_vm2, %v533_v50  ;;  %630 = vst.msk [vmem:[%s1354_s3 + $0x1b8] sm:$0xff] %vm574_vm2, %v565_v51 }
 0x10b   :  { %596 = vst.msk [vmem:[%s1354_s3 + $0xa8] sm:$0xff] %vm574_vm2, %v531_v52  ;;  %628 = vst.msk [vmem:[%s1354_s3 + $0x1a8] sm:$0xff] %vm574_vm2, %v563_v53  ;;  %v737_v54 = vpop.f32.mrb[24].mxu0  ;;  %v769_v55 = vpop.f32.mrb[24].mxu1 }
 0x10c   :  { %v360_v56 = vadd.f32 %v737_v54, %v1029_v35  ;;  %v488_v57 = vadd.f32 %v769_v55, %v1029_v35  ;;  %v351_v58 = vpop.f32.mrb[25].mxu0  ;;  %v479_v59 = vpop.f32.mrb[25].mxu1 }
 0x10d   :  { %v352_v60 = vadd.f32 %v1029_v35, %v351_v58  ;;  %v480_v61 = vadd.f32 %v1029_v35, %v479_v59  ;;  %v738_v62 = vpop.f32.mrb[26].mxu0  ;;  %v770_v63 = vpop.f32.mrb[26].mxu1 }
 0x10e   :  { %v536_v0 = vmax.f32 %v360_v56, 0.0  ;;  %v568_v1 = vmax.f32 %v488_v57, 0.0  ;;  %v363_v2 = vadd.f32 %v738_v62, %v1029_v35  ;;  %v491_v3 = vadd.f32 %v770_v63, %v1029_v35  ;;  %v354_v4 = vpop.f32.mrb[27].mxu0  ;;  %v482_v5 = vpop.f32.mrb[27].mxu1 }
 0x10f   :  { %v534_v6 = vmax.f32 %v352_v60, 0.0  ;;  %v566_v7 = vmax.f32 %v480_v61, 0.0  ;;  %v355_v8 = vadd.f32 %v1029_v35, %v354_v4  ;;  %v483_v9 = vadd.f32 %v1029_v35, %v482_v5 }
 0x110   :  { %601 = vst.msk [vmem:[%s1354_s3 + $0xd0] sm:$0xff] %vm574_vm2, %v536_v0  ;;  %633 = vst.msk [vmem:[%s1354_s3 + $0x1d0] sm:$0xff] %vm574_vm2, %v568_v1  ;;  %v537_v10 = vmax.f32 %v363_v2, 0.0  ;;  %v569_v11 = vmax.f32 %v491_v3, 0.0 }
 0x111   :  { %599 = vst.msk [vmem:[%s1354_s3 + $0xc0] sm:$0xff] %vm574_vm2, %v534_v6  ;;  %631 = vst.msk [vmem:[%s1354_s3 + $0x1c0] sm:$0xff] %vm574_vm2, %v566_v7  ;;  %v535_v12 = vmax.f32 %v355_v8, 0.0  ;;  %v567_v13 = vmax.f32 %v483_v9, 0.0 }
 0x112   :  { %602 = vst.msk [vmem:[%s1354_s3 + $0xd8] sm:$0xff] %vm574_vm2, %v537_v10  ;;  %634 = vst.msk [vmem:[%s1354_s3 + $0x1d8] sm:$0xff] %vm574_vm2, %v569_v11 }
 0x113   :  { %600 = vst.msk [vmem:[%s1354_s3 + $0xc8] sm:$0xff] %vm574_vm2, %v535_v12  ;;  %632 = vst.msk [vmem:[%s1354_s3 + $0x1c8] sm:$0xff] %vm574_vm2, %v567_v13  ;;  %v741_v14 = vpop.f32.mrb[28].mxu0  ;;  %v773_v15 = vpop.f32.mrb[28].mxu1 }
 0x114   :  { %v376_v16 = vadd.f32 %v741_v14, %v1029_v35  ;;  %v504_v17 = vadd.f32 %v773_v15, %v1029_v35  ;;  %v367_v18 = vpop.f32.mrb[29].mxu0  ;;  %v495_v19 = vpop.f32.mrb[29].mxu1 }
 0x115   :  { %v368_v20 = vadd.f32 %v1029_v35, %v367_v18  ;;  %v496_v21 = vadd.f32 %v1029_v35, %v495_v19  ;;  %v742_v22 = vpop.f32.mrb[30].mxu0  ;;  %v774_v23 = vpop.f32.mrb[30].mxu1 }
 0x116   :  { %v540_v24 = vmax.f32 %v376_v16, 0.0  ;;  %v572_v25 = vmax.f32 %v504_v17, 0.0  ;;  %v379_v26 = vadd.f32 %v742_v22, %v1029_v35  ;;  %v507_v27 = vadd.f32 %v774_v23, %v1029_v35  ;;  %v370_v28 = vpop.f32.mrb[31].mxu0  ;;  %v498_v29 = vpop.f32.mrb[31].mxu1 }
 0x117   :  { %v538_v30 = vmax.f32 %v368_v20, 0.0  ;;  %v570_v31 = vmax.f32 %v496_v21, 0.0  ;;  %v371_v32 = vadd.f32 %v1029_v35, %v370_v28  ;;  %v499_v33 = vadd.f32 %v1029_v35, %v498_v29 }
 0x118   :  { %605 = vst.msk [vmem:[%s1354_s3 + $0xf0] sm:$0xff] %vm574_vm2, %v540_v24  ;;  %637 = vst.msk [vmem:[%s1354_s3 + $0x1f0] sm:$0xff] %vm574_vm2, %v572_v25  ;;  %v541_v34 = vmax.f32 %v379_v26, 0.0  ;;  %v573_v36 = vmax.f32 %v507_v27, 0.0 }
 0x119   :  { %603 = vst.msk [vmem:[%s1354_s3 + $0xe0] sm:$0xff] %vm574_vm2, %v538_v30  ;;  %635 = vst.msk [vmem:[%s1354_s3 + $0x1e0] sm:$0xff] %vm574_vm2, %v570_v31  ;;  %v539_v35 = vmax.f32 %v371_v32, 0.0  ;;  %v571_v37 = vmax.f32 %v499_v33, 0.0 }
 0x11a   :  { %606 = vst.msk [vmem:[%s1354_s3 + $0xf8] sm:$0xff] %vm574_vm2, %v541_v34  ;;  %638 = vst.msk [vmem:[%s1354_s3 + $0x1f8] sm:$0xff] %vm574_vm2, %v573_v36 }
 0x11b   :  { %604 = vst.msk [vmem:[%s1354_s3 + $0xe8] sm:$0xff] %vm574_vm2, %v539_v35  ;;  %636 = vst.msk [vmem:[%s1354_s3 + $0x1e8] sm:$0xff] %vm574_vm2, %v571_v37 }

</bundles_post_ra>
